<compile_context>
chip_gen: v7x
topology: tpu7x:2x2x1
jax: 0.10.0
libtpu: 0.0.40
codegen_flags: <defaults>
</compile_context>

<pallas_src>
import functools

import numpy as np
import jax
import jax.numpy as jnp
from jax.experimental import pallas as pl
from jax.experimental.pallas import tpu as pltpu


def _scalar_activation_kernel(x_ref, expand_ref, o_ref, *, num_scalars):
    x = x_ref[...]                                       # (TN, D), native dtype
    s = x[:, :num_scalars].astype(jnp.float32)           # (TN, C) l=0 scalars
    g = jax.nn.sigmoid(s)                                # gates (EUP)
    # Broadcast each channel's gate into its scalar column AND its l>0 columns
    # via one tiny 0/1 matmul:  (TN, C) @ (C, D) -> (TN, D).
    gate_full = jnp.dot(g, expand_ref[...], preferred_element_type=jnp.float32)
    # scalar cols: sigmoid(s)*s = silu(s); gated cols: sigmoid(s_c) * x.
    o_ref[...] = (gate_full * x).astype(o_ref.dtype)


def _build_expand(num_channels, lmax):
    """Host-side (numpy) 0/1 expansion matrix mapping channel-c gate to all of
    channel c's columns (its scalar column and every l>0 component)."""
    C = num_channels
    D = C * (lmax + 1) ** 2
    expand = np.zeros((C, D), np.float32)
    expand[np.arange(C), np.arange(C)] = 1.0            # scalar (l=0) columns
    off = C
    for l in range(1, lmax + 1):
        dim = 2 * l + 1
        for c in range(C):
            expand[c, off + c * dim: off + (c + 1) * dim] = 1.0
        off += C * dim
    return jnp.asarray(expand)


def _round_up(v, m):
    return ((v + m - 1) // m) * m


def _pick_row_tile(N, D, itemsize, *, max_rows=2048, vmem_budget_bytes=24 << 20):
    """Largest dtype-aligned row tile fitting the VMEM budget, capped so the
    grid has >= ~4 steps (pipelining + both v7x TensorCores) when N allows."""
    sublane = max(8, 32 // itemsize)                     # 8 f32 / 16 bf16 / 32 int8
    # 2 double-buffered input tiles + 2 output tiles (native dtype)
    # + ~3 full-width f32 intermediates (matmul result, product, slack).
    bytes_per_row = 4 * D * itemsize + 3 * D * 4
    t = vmem_budget_bytes // max(bytes_per_row, 1)
    t = min(t, max_rows)
    t = min(t, _round_up(-(-N // 4), sublane))           # >= ~4 grid steps
    t = min(t, _round_up(N, sublane))                    # don't exceed padded N
    t = max(sublane, (t // sublane) * sublane)
    return t, bytes_per_row


def scalar_activation(x, num_channels, lmax, *, row_tile=None):
    """Pallas implementation of ScalarActivation.forward for
    irreps_in = f"{C}x0e + {C}x1o + ... + {C}x{lmax}{parity}"."""
    N, D = x.shape
    C = num_channels
    assert D == C * (lmax + 1) ** 2, "feature dim must equal C*(lmax+1)^2"

    itemsize = jnp.dtype(x.dtype).itemsize
    sublane = max(8, 32 // itemsize)
    picked, bytes_per_row = _pick_row_tile(N, D, itemsize)
    if row_tile is None:
        row_tile = picked
    row_tile = max(sublane, (row_tile // sublane) * sublane)

    # Ragged N: no pad/slice round trip; Pallas masks the partial last block.
    n_blocks = pl.cdiv(N, row_tile)

    expand = _build_expand(C, lmax)

    # Scoped-VMEM limit consistent with the tile pick (+const, +headroom),
    # capped at 40 MiB so it is safe on v7x's 64 MiB VMEM.
    const_bytes = 2 * C * D * 4
    need = row_tile * bytes_per_row + const_bytes
    vmem_limit = int(min(max(need + (4 << 20), 8 << 20), 40 << 20))

    kernel = functools.partial(_scalar_activation_kernel, num_scalars=C)
    return pl.pallas_call(
        kernel,
        out_shape=jax.ShapeDtypeStruct((N, D), x.dtype),
        grid=(n_blocks,),
        in_specs=[
            pl.BlockSpec((row_tile, D), lambda i: (i, 0)),
            pl.BlockSpec((C, D), lambda i: (0, 0)),      # resident constant
        ],
        out_specs=pl.BlockSpec((row_tile, D), lambda i: (i, 0)),
        compiler_params=pltpu.CompilerParams(
            dimension_semantics=("parallel",),
            vmem_limit_bytes=vmem_limit,
        ),
    )(x, expand)


def _reference(x, C, lmax):
    """Plain-JAX reference mirroring the PyTorch forward (SiLU scalars, sigmoid gates)."""
    x = x.astype(jnp.float32)
    scalars = x[:, :C]
    outs = [jax.nn.silu(scalars)]
    gates = jax.nn.sigmoid(scalars)
    off = C
    for l in range(1, lmax + 1):
        dim = 2 * l + 1
        blk = x[:, off:off + C * dim].reshape(x.shape[0], C, dim)
        outs.append((blk * gates[:, :, None]).reshape(x.shape[0], C * dim))
        off += C * dim
    return jnp.concatenate(outs, axis=-1)


if __name__ == "__main__":
    # irreps_in = "8x0e + 8x1o + 8x2e + 8x3o" -> num_spherical = 4, D = 128
    C, lmax = 8, 3
    N = 1000                      # deliberately ragged vs. the row tile
    D = C * (lmax + 1) ** 2

    key = jax.random.PRNGKey(0)
    x = jax.random.normal(key, (N, D), jnp.float32)

    # float32 path
    out = jax.block_until_ready(scalar_activation(x, C, lmax))
    ref = _reference(x, C, lmax)
    assert out.shape == (N, D) and out.dtype == x.dtype
    assert jnp.allclose(out, ref, atol=1e-5, rtol=1e-5), float(jnp.max(jnp.abs(out - ref)))

    # bf16 I/O path (halves HBM traffic; internal compute stays f32)
    x_bf16 = x.astype(jnp.bfloat16)
    out_bf16 = jax.block_until_ready(scalar_activation(x_bf16, C, lmax))
    ref_bf16 = _reference(x_bf16, C, lmax)
    assert out_bf16.shape == (N, D) and out_bf16.dtype == jnp.bfloat16
    assert jnp.allclose(out_bf16.astype(jnp.float32), ref_bf16, atol=2e-2, rtol=2e-2)

    print("KERNEL_OK")
</pallas_src>

<mosaic_0001>
module attributes {stable_mosaic.version = 11 : i64} {
  func.func @_scalar_activation_kernel(%arg0: i32, %arg1: memref<256x128xf32, #tpu.memory_space<vmem>>, %arg2: memref<8x128xf32, #tpu.memory_space<vmem>>, %arg3: memref<256x128xf32, #tpu.memory_space<vmem>>) attributes {dimension_semantics = [#tpu.dimension_semantics<parallel>], iteration_bounds = array<i64: 4>, scalar_prefetch = 0 : i64, scratch_operands = 0 : i64, tpu.core_type = #tpu.core_type<tc>, window_params = [{transform_indices = @transform_0, window_bounds = array<i64: 256, 128>}, {pipeline_mode = #tpu.pipeline_mode<synchronous>, transform_indices = @transform_1, window_bounds = array<i64: 8, 128>}, {transform_indices = @transform_2, window_bounds = array<i64: 256, 128>}]} {
    %c0 = arith.constant 0 : index
    %c0_0 = arith.constant 0 : index
    %0 = vector.load %arg1[%c0, %c0_0] : memref<256x128xf32, #tpu.memory_space<vmem>>, vector<256x128xf32>
    %1 = vector.extract_strided_slice %0 {offsets = [0, 0], sizes = [256, 8], strides = [1, 1]} : vector<256x128xf32> to vector<256x8xf32>
    %2 = arith.negf %1 : vector<256x8xf32>
    %3 = math.exp %2 : vector<256x8xf32>
    %cst = arith.constant 1.000000e+00 : f32
    %4 = vector.broadcast %cst : f32 to vector<256x8xf32>
    %5 = arith.addf %4, %3 : vector<256x8xf32>
    %6 = arith.divf %4, %5 : vector<256x8xf32>
    %c0_1 = arith.constant 0 : index
    %c0_2 = arith.constant 0 : index
    %7 = vector.load %arg2[%c0_1, %c0_2] : memref<8x128xf32, #tpu.memory_space<vmem>>, vector<8x128xf32>
    %cst_3 = arith.constant dense<0.000000e+00> : vector<256x128xf32>
    %8 = tpu.matmul %6, %7, %cst_3 {dimension_numbers = #tpu.dot_dimension_numbers<[1], [0], [0], [1], [0, 0, 1, 1], [], []>} : vector<256x8xf32>, vector<8x128xf32>, vector<256x128xf32> -> vector<256x128xf32>
    %9 = arith.mulf %8, %0 : vector<256x128xf32>
    %c0_4 = arith.constant 0 : index
    %c0_5 = arith.constant 0 : index
    %10 = vector.load %arg3[%c0_4, %c0_5] : memref<256x128xf32, #tpu.memory_space<vmem>>, vector<256x128xf32>
    tpu.vector_store %arg3[%c0_4, %c0_5], %9 {strides = array<i32>} : memref<256x128xf32, #tpu.memory_space<vmem>>, vector<256x128xf32>,
    return
  }
  func.func @transform_0(%arg0: i32) -> (i32, i32) {
    %c0_i32 = arith.constant 0 : i32
    %c0_i32_0 = arith.constant 0 : i32
    return %arg0, %c0_i32 : i32, i32
  }
  func.func @transform_1(%arg0: i32) -> (i32, i32) {
    %c0_i32 = arith.constant 0 : i32
    %c0_i32_0 = arith.constant 0 : i32
    %c0_i32_1 = arith.constant 0 : i32
    return %c0_i32, %c0_i32_0 : i32, i32
  }
  func.func @transform_2(%arg0: i32) -> (i32, i32) {
    %c0_i32 = arith.constant 0 : i32
    %c0_i32_0 = arith.constant 0 : i32
    return %arg0, %c0_i32 : i32, i32
  }
}

</mosaic_0001>

<bundles_post_ra>
// kernel: tpu_custom_call.1
= control target key start
LH: loop header
LB: loop body
LE: loop exit
PB: predicated region body
PF: predicated region fallthrough
CT: control target
= control target key end

     0   :  { %7 = vsyncpa [#allocation3], 0  ;;  %s1854_s0 = inlined_call_operand.hbm [shape: f32[1000,128], index: 0, kind: input, shape index: {}]   ;;  %s1855_s1 = inlined_call_operand.hbm [shape: f32[8,128], index: 1, kind: input, shape index: {}]   ;;  %s1856_s2 = inlined_call_operand.hbm [shape: f32[1000,128], index: 2, kind: output, shape index: {}]  }
   0x1   :  { %9 = vsyncpa [#allocation3 + $0x1], 0 }
   0x2   :  { %10 = vsyncpa [#allocation6], 0 }
   0x3   :  { %11 = vsyncpa [#allocation4], 0 }
   0x4   :  { %13 = vsyncpa [#allocation4 + $0x1], 0  ;;  %s1412_s9 = smov 0   ;;  %s1414_s10 = smov 0  }
   0x5   :  { %s1416_s11 = smov 0   ;;  %s1418_s12 = smov 0  }
   0x6 LB: > { %s1433_s13 = sadd.s32 4294967295, %s1388_s12   ;;  %s905_s14 = sadd.s32 4294967294, %s1388_s12   ;;  %s1388_s12 = sphi %s1418_s12, %s1876_s12   ;;  %s1384_s11 = sphi %s1416_s11, %s1875_s11   ;;  %s1380_s10 = sphi %s1414_s10, %s1874_s10   ;;  %s1376_s9 = sphi %s1412_s9, %s1873_s9  }
   0x7   : > { %s1437_s15 = sadd.s32 1, %s1388_s12   ;;  %s26_s16 = sadd.s32 1, %s1384_s11 }
   0x8   : > { %s23_s17 = ssub.s32 %s1388_s12, %s1437_s15  ;;  %p33_p0 = scmp.ne.s32.totalorder %s1384_s11, %s1380_s10 }
   0x9   : > { %p24_p1 = scmp.eq.s32.totalorder %s23_s17, 0  ;;  %p34_p2 = scmp.eq.s32.totalorder %s1388_s12, 0 }
   0xa   : > { %p39_p3 = scmp.ne.s32.totalorder %s1380_s10, %s1376_s9  ;;  %p1857_p4 = scmp.eq.s32.totalorder %s1433_s13, 0 }
   0xb   : > { %s1449_s18 = scalar_select %p24_p1, %s1384_s11, %s26_s16  }
   0xc   : > { %p1451_p5 = por %p34_p2, %p33_p0  ;;  %p1457_p6 = por %p1857_p4, %p39_p3 }
   0xd   : > { %p84_p7 = scmp.eq.s32.totalorder %s1433_s13, 3  ;;  %p90_p8 = scmp.eq.s32.totalorder %s905_s14, 3 }
   0xe   : > { %s1860_s19 = scalar_select %p1451_p5, 1, 0 }
   0xf   : > { %s1861_s20 = scalar_select %p1457_p6, 1, 0 }
  0x10   : > { %p906_p9 = scmp.ge.s32.totalorder %s1388_s12, 1  ;;  %p97_p10 = scmp.lt.s32.totalorder %s1388_s12, 5 }
  0x11   : > { %p1464_p11 = por %p84_p7, %p33_p0  ;;  %p1468_p12 = por %p90_p8, %p39_p3 }
  0x12   : > { %p1472_p13 = pnand %p906_p9, %p97_p10  ;;  %s1390_s24 = smov [#allocation5]  }
  0x13   : > { %s1862_s21 = scalar_select %p1464_p11, 1, 0 }
  0x14   : > { %s1863_s22 = scalar_select %p1468_p12, 1, 0 }
  0x15   : > { %s1864_s23 = scalar_select %p1472_p13, 1, 0 }
  0x16   : > { %p1086_p1 = pneg %p1472_p13  ;;  %s110_s25 = sshll.u32 %s1390_s24, 4  ;;  %s111_s25 = int_to_ptr.vmem [resolvable:$true] %s110_s25 }
  0x17   : > { %s1262_s29 = scalar_lea.hbm %s1855_s1, 128 }
  0x18   : > { %p1480_p2 = pnand %p1086_p1, %p1857_p4  ;;  %p1263_p0 = scmp.ne.s32.totalorder %s1855_s1, %s1262_s29 }
  0x19   : > { %p1269_p9 = scmp.lt.u32.totalorder %s1262_s29, %s1855_s1 }
  0x1a   : > { %p1264_p3 = pneg %p1480_p2 }
  0x1c   : > { %p1265_p7 = pnand %p1264_p3, %p1263_p0 }
  0x1e   : > { %p1266_p8 = pneg %p1265_p7 }
  0x20   : > { %p1271_p10 = pnand %p1269_p9, %p1266_p8 }
  0x22   : > { %1274 = shalt.err (!%p1271_p10)
}
  0x23   : > { %s1275_s6 = scalar_lea.vmem %s111_s25, 128  ;;  %p1283_p11 = scmp.lt.s32.totalorder %s111_s25, %s111_s25 }
  0x24   : > { %p1276_p1 = scmp.ne.s32.totalorder %s111_s25, %s1275_s6  ;;  %p1284_p6 = scmp.lt.s32.totalorder %s1275_s6, %s1275_s6 }
  0x26   : > { %p1278_p4 = pnand %p1276_p1, %p1264_p3  ;;  %p1285_p13 = por %p1284_p6, %p1283_p11 }
  0x28   : > { %p1279_p12 = pneg %p1278_p4 }
  0x2a   : > { %p1286_p5 = pnand %p1285_p13, %p1279_p12 }
  0x2c   : > { %1289 = shalt.err (!%p1286_p5)
}
  0x2d   : > { %1089 = dma.hbm_to_vmem [thread:$0]  (!%p1480_p2), %s1855_s1, 128, %s111_s25, [#allocation6]  }
  0x2e   : > { %p908_p0 = scmp.ge.s32.totalorder %s1388_s12, 4 }
  0x2f   : > { %p1866_p7 = scmp.ne.s32.totalorder (!%p908_p0), %s1860_s19, 0 }
  0x30   : > { %117 = sbr.rel (%p908_p0) target bundleno = 90 (0x5a), region = 20 }
  0x37   : > { %120 = sbr.rel (!%p1866_p7) target bundleno = 90 (0x5a), region = 24  ;;  %s121_s14 = sand.u32 (%p1866_p7), 1, %s1384_s11  }
  0x38   : > { %s910_s16 = sshll.u32 (%p1866_p7), %s1388_s12, 5  ;;  %s909_s17 = sshll.u32 (%p1866_p7), %s121_s14, 8 }
  0x39   : > { %s127_s24 = ssub.s32 (%p1866_p7), 125, %s910_s16  ;;  %s1508_s28 = scalar_lea.sflag (%p1866_p7), [#allocation3], %s121_s14 }
  0x3a   : > { %p128_p4 = scmp.lt.s32.totalorder (%p1866_p7), %s127_s24, 32  ;;  %s125_s25 = scalar_lea.vmem (%p1866_p7), [#allocation2], %s909_s17 }
  0x3e   : > { %s1878_s24 = smov (!%p128_p4, %s127_s24), 32 }
  0x3f   : > { %s1505_s27 = sshll.u32 %s1878_s24, 7 }
  0x40   : > { %s132_s26 = ssub.s32 4096, %s1505_s27 }
  0x41   : > { %133 = vsyncadd %s1508_s28, %s132_s26  ;;  %p912_p5 = scmp.ne.s32.totalorder %s1505_s27, 0  ;;  %s993_s19 = sshll.u32 %s1388_s12, 12 }
  0x42   : > { %s1516_s3 = scalar_lea.hbm %s1854_s0, %s993_s19  ;;  %s138_s4 = sshll.u32 %s125_s25, 4  ;;  %s1518_s4 = int_to_ptr.vmem [resolvable:$true] %s138_s4 }
  0x43   : > { %s1290_s5 = scalar_lea.hbm %s1516_s3, %s1505_s27  ;;  %s1294_s8 = scalar_lea.hbm %s1854_s0, 16000 }
  0x44   : > { %p1291_p6 = scmp.ne.s32.totalorder %s1516_s3, %s1290_s5  ;;  %p1295_p13 = scmp.lt.u32.totalorder %s1516_s3, %s1854_s0 }
  0x45   : > { %p1296_p2 = scmp.lt.u32.totalorder %s1294_s8, %s1290_s5  ;;  %p1298_p8 = scmp.lt.u32.totalorder %s1290_s5, %s1516_s3 }
  0x46   : > { %p1292_p11 = pnand %p1291_p6, %p912_p5 }
  0x47   : > { %p1297_p3 = por %p1296_p2, %p1295_p13 }
  0x48   : > { %p1293_p12 = pneg %p1292_p11 }
  0x49   : > { %p1299_p9 = por %p1298_p8, %p1297_p3 }
  0x4b   : > { %p1300_p10 = pnand %p1299_p9, %p1293_p12 }
  0x4d   : > { %1303 = shalt.err (!%p1300_p10)
}
  0x4e   : > { %s1304_s17 = scalar_lea.vmem %s1518_s4, %s1505_s27  ;;  %s1391_s24 = smov [#allocation2]  }
  0x4f   : > { %p1305_p1 = scmp.ne.s32.totalorder %s1518_s4, %s1304_s17  ;;  %s1308_s26 = sshll.u32 %s1391_s24, 4  ;;  %s1309_s26 = int_to_ptr.vmem [resolvable:$false] %s1308_s26 }
  0x50   : > { %s1310_s25 = scalar_lea.vmem %s1309_s26, 8192  ;;  %p1311_p4 = scmp.lt.s32.totalorder %s1518_s4, %s1309_s26 }
  0x51   : > { %p1306_p0 = pnand %p1305_p1, %p912_p5  ;;  %p1312_p6 = scmp.lt.s32.totalorder %s1310_s25, %s1304_s17 }
  0x53   : > { %p1307_p7 = pneg %p1306_p0  ;;  %p1313_p11 = por %p1312_p6, %p1311_p4 }
  0x55   : > { %p1314_p13 = pnand %p1313_p11, %p1307_p7 }
  0x57   : > { %1317 = shalt.err (!%p1314_p13)
}
  0x58   : > { %s1392_s19 = smov 128   ;;  %s1393_s29 = smov 8  }
  0x59   : > { %144 = dma.hbm_to_vmem [thread:$0]  (%p912_p5), %s1516_s3, %s1505_s27, %s1518_s4, %s1508_s28, %s1392_s19, %s1392_s19, %s1393_s29  }
  0x5a PF: > { %p1867_p12 = scmp.ne.s32.totalorder %s1864_s23, 0 }
  0x5b   : > { %s1548_s30 = sand.u32 (!%p1867_p12), 1, %s1380_s10   ;;  %p1868_p2 = scmp.ne.s32.totalorder (!%p1867_p12), %s1861_s20, 0 }
  0x5c   : > { %150 = sbr.rel (%p1867_p12) target bundleno = 432 (0x1b0), region = 28  ;;  %s917_s5 = sshll.u32 (!%p1867_p12), %s1548_s30, 8 }
  0x5d   : > { %s153_s6 = scalar_lea.sflag (!%p1867_p12), [#allocation3], %s1548_s30  ;;  %s1554_s7 = scalar_lea.vmem (!%p1867_p12), [#allocation2], %s917_s5 }
  0x63   : > { %1363 = dma.done.wait (%p1868_p2), %s153_s6, 4096  }
  0x64   : > { %1365 = vsyncadd (%p1868_p2), %s153_s6, 4294963200  ;;  %p1869_p5 = scmp.eq.s32.totalorder %s1433_s13, 0 }
  0x66   : > { %1367 = dma.done.wait (%p1869_p5), [#allocation6], 128   ;;  %p1870_p3 = pmov %p1869_p5 }
  0x67   : > { %v415_v0 = vld [vmem:[#allocation5] sm:$0xff]  ;;  %v1573_v5 = vld [vmem:[%s1554_s7 + $0x8] sm:$0xff]  ;;  %v1581_v9 = vld [vmem:[%s1554_s7 + $0x10] sm:$0xff]  ;;  %vm416_vm0 = vcmask 64512   ;;  %s1729_s20 = scalar_lea.vmem [#allocation7], %s917_s5  ;;  %s803_s23 = scalar_lea.sflag [#allocation4], %s1548_s30 }
  0x68   : > { %1369 = vsyncadd (%p1870_p3), [#allocation6], 4294967168  ;;  %v1565_v1 = vld [vmem:[%s1554_s7] sm:$0xff]  ;;  %1028 = vmatprep.subr.mxu0 %v415_v0  ;;  %1078 = vmatprep.subr.mxu1 %v415_v0  ;;  %v1576_v6 = vld [vmem:[%s1554_s7 + $0x88] sm:$0xff]  ;;  %v921_v7 = vmul.f32 -1.442695, %v1573_v5 }
  0x69   : > { %v1568_v2 = vld [vmem:[%s1554_s7 + $0x80] sm:$0xff]  ;;  %v920_v3 = vmul.f32 -1.442695, %v1565_v1  ;;  %1029 = vmatpush3.msra.mxu0 %v415_v0  ;;  %1079 = vmatpush3.msra.mxu1 %v415_v0  ;;  %v937_v8 = vmul.f32 -1.442695, %v1576_v6  ;;  %v1584_v10 = vld [vmem:[%s1554_s7 + $0x90] sm:$0xff] }
  0x6a   : > { %v936_v4 = vmul.f32 -1.442695, %v1568_v2  ;;  %v922_v11 = vmul.f32 -1.442695, %v1581_v9  ;;  %v1588_v12 = vld [vmem:[%s1554_s7 + $0x18] sm:$0xff]  ;;  %v1595_v15 = vld [vmem:[%s1554_s7 + $0x20] sm:$0xff] }
  0x6b   : > { %1134 = vpow2.f32 %v920_v3  ;;  %v1591_v13 = vld [vmem:[%s1554_s7 + $0x98] sm:$0xff]  ;;  %v938_v14 = vmul.f32 -1.442695, %v1584_v10  ;;  %v923_v16 = vmul.f32 -1.442695, %v1588_v12  ;;  %v1599_v17 = vld [vmem:[%s1554_s7 + $0xa0] sm:$0xff] }
  0x6c   : > { %1136 = vpow2.f32 %v936_v4  ;;  %v939_v18 = vmul.f32 -1.442695, %v1591_v13  ;;  %v1603_v19 = vld [vmem:[%s1554_s7 + $0x28] sm:$0xff]  ;;  %v924_v20 = vmul.f32 -1.442695, %v1595_v15  ;;  %v1611_v23 = vld [vmem:[%s1554_s7 + $0x30] sm:$0xff] }
  0x6d   : > { %1138 = vpow2.f32 %v921_v7  ;;  %v1607_v21 = vld [vmem:[%s1554_s7 + $0xa8] sm:$0xff]  ;;  %v940_v22 = vmul.f32 -1.442695, %v1599_v17  ;;  %v925_v24 = vmul.f32 -1.442695, %v1603_v19  ;;  %v1617_v46 = vld [vmem:[%s1554_s7 + $0xb0] sm:$0xff] }
  0x6e   : > { %1140 = vpow2.f32 %v937_v8  ;;  %v941_v25 = vmul.f32 -1.442695, %v1607_v21  ;;  %v926_v26 = vmul.f32 -1.442695, %v1611_v23  ;;  %v1620_v49 = vld [vmem:[%s1554_s7 + $0x38] sm:$0xff]  ;;  %v1627_v56 = vld [vmem:[%s1554_s7 + $0x40] sm:$0xff] }
  0x6f   : > { %1142 = vpow2.f32 %v922_v11  ;;  %v1623_v52 = vld [vmem:[%s1554_s7 + $0xb8] sm:$0xff]  ;;  %v942_v55 = vmul.f32 -1.442695, %v1617_v46  ;;  %v927_v59 = vmul.f32 -1.442695, %v1620_v49  ;;  %v1631_v60 = vld [vmem:[%s1554_s7 + $0xc0] sm:$0xff] }
  0x70   : > { %1144 = vpow2.f32 %v938_v14  ;;  %v943_v62 = vmul.f32 -1.442695, %v1623_v52  ;;  %v1636_v63 = vld [vmem:[%s1554_s7 + $0x48] sm:$0xff]  ;;  %v928_v3 = vmul.f32 -1.442695, %v1627_v56  ;;  %v1646_v11 = vld [vmem:[%s1554_s7 + $0x50] sm:$0xff] }
  0x71   : > { %1146 = vpow2.f32 %v923_v16  ;;  %v1641_v4 = vld [vmem:[%s1554_s7 + $0xc8] sm:$0xff]  ;;  %v944_v8 = vmul.f32 -1.442695, %v1631_v60  ;;  %v929_v16 = vmul.f32 -1.442695, %v1636_v63  ;;  %p1871_p8 = scmp.ne.s32.totalorder %s1862_s21, 0 }
  0x72   : > { %1148 = vpow2.f32 %v939_v18  ;;  %v1651_v18 = vld [vmem:[%s1554_s7 + $0xd0] sm:$0xff]  ;;  %s985_s27 = sshll.u32 (%p1871_p8), %s1433_s13, 5 }
  0x73   : > { %1150 = vpow2.f32 %v924_v20  ;;  %s811_s28 = ssub.s32 (%p1871_p8), 125, %s985_s27 }
  0x74   : > { %1152 = vpow2.f32 %v940_v22  ;;  %v945_v22 = vmul.f32 -1.442695, %v1641_v4  ;;  %p812_p9 = scmp.lt.s32.totalorder (%p1871_p8), %s811_s28, 32 }
  0x75   : > { %v1135_v27 = vpop.eup %1134  ;;  %1154 = vpow2.f32 %v925_v24  ;;  %v1656_v24 = vld [vmem:[%s1554_s7 + $0x58] sm:$0xff] }
  0x76   : > { %v1137_v28 = vpop.eup %1136  ;;  %v319_v29 = vadd.f32 1.0, %v1135_v27  ;;  %1156 = vpow2.f32 %v941_v25  ;;  %v1661_v27 = vld [vmem:[%s1554_s7 + $0xd8] sm:$0xff] }
  0x77   : > { %v1139_v30 = vpop.eup %1138  ;;  %v335_v31 = vadd.f32 1.0, %v1137_v28  ;;  %1158 = vpow2.f32 %v926_v26  ;;  %v930_v26 = vmul.f32 -1.442695, %v1646_v11 }
  0x78   : > { %v1141_v32 = vpop.eup %1140  ;;  %1160 = vrcp.f32 %v319_v29  ;;  %v320_v33 = vadd.f32 1.0, %v1139_v30  ;;  %v946_v29 = vmul.f32 -1.442695, %v1651_v18  ;;  %v1666_v30 = vld [vmem:[%s1554_s7 + $0x60] sm:$0xff] }
  0x79   : > { %v1143_v34 = vpop.eup %1142  ;;  %1162 = vrcp.f32 %v335_v31  ;;  %v336_v35 = vadd.f32 1.0, %v1141_v32  ;;  %v931_v32 = vmul.f32 -1.442695, %v1656_v24 }
  0x7a   : > { %v1145_v36 = vpop.eup %1144  ;;  %1164 = vrcp.f32 %v320_v33  ;;  %v321_v37 = vadd.f32 1.0, %v1143_v34  ;;  %v1671_v33 = vld [vmem:[%s1554_s7 + $0xe0] sm:$0xff] }
  0x7b   : > { %v1147_v38 = vpop.eup %1146  ;;  %1166 = vrcp.f32 %v336_v35  ;;  %v337_v39 = vadd.f32 1.0, %v1145_v36  ;;  %v947_v35 = vmul.f32 -1.442695, %v1661_v27 }
  0x7c   : > { %v1149_v40 = vpop.eup %1148  ;;  %1168 = vrcp.f32 %v321_v37  ;;  %v322_v41 = vadd.f32 1.0, %v1147_v38  ;;  %v932_v37 = vmul.f32 -1.442695, %v1666_v30 }
  0x7d   : > { %v1151_v42 = vpop.eup %1150  ;;  %1170 = vrcp.f32 %v337_v39  ;;  %v338_v43 = vadd.f32 1.0, %v1149_v40  ;;  %v948_v39 = vmul.f32 -1.442695, %v1671_v33 }
  0x7e   : > { %v1153_v44 = vpop.eup %1152  ;;  %1172 = vrcp.f32 %v322_v41  ;;  %v323_v45 = vadd.f32 1.0, %v1151_v42 }
  0x7f   : > { %v1155_v47 = vpop.eup %1154  ;;  %1174 = vrcp.f32 %v338_v43  ;;  %v339_v48 = vadd.f32 1.0, %v1153_v44 }
  0x80   : > { %v1157_v50 = vpop.eup %1156  ;;  %1176 = vrcp.f32 %v323_v45  ;;  %v324_v51 = vadd.f32 1.0, %v1155_v47 }
  0x81   : > { %v1159_v53 = vpop.eup %1158  ;;  %1178 = vrcp.f32 %v339_v48  ;;  %v340_v54 = vadd.f32 1.0, %v1157_v50 }
  0x82   : > { %v1161_v57 = vpop.eup %1160  ;;  %1180 = vrcp.f32 %v324_v51  ;;  %v325_v58 = vadd.f32 1.0, %v1159_v53 }
  0x83   : > { %v1163_v61 = vpop.eup %1162  ;;  %1030 = vmatprep.mubr.msk.f32.mxu0 %vm416_vm0, %v1161_v57  ;;  %1182 = vrcp.f32 %v340_v54 }
  0x84   : > { %v1165_v0 = vpop.eup %1164  ;;  %1054 = vmatprep.mubr.msk.f32.mxu1 %vm416_vm0, %v1163_v61  ;;  %1184 = vrcp.f32 %v325_v58 }
  0x85   : > { %v1167_v7 = vpop.eup %1166  ;;  %1031 = vmatmul.mubr.msk.f32.vlgmr.msra.gmra.mrb[0].mxu0 %vm416_vm0, %v1165_v0  ;;  %1186 = vpow2.f32 %v942_v55 }
  0x86   : > { %v1169_v14 = vpop.eup %1168  ;;  %1055 = vmatmul.mubr.msk.f32.vlgmr.msra.gmra.mrb[0].mxu1 %vm416_vm0, %v1167_v7  ;;  %1188 = vpow2.f32 %v927_v59  ;;  %v1682_v7 = vld [vmem:[%s1554_s7 + $0x68] sm:$0xff] }
  0x87   : > { %v1171_v20 = vpop.eup %1170  ;;  %1033 = vmatprep.mubr.msk.f32.mxu0 %vm416_vm0, %v1169_v14  ;;  %1190 = vpow2.f32 %v943_v62 }
  0x88   : > { %v1173_v25 = vpop.eup %1172  ;;  %1057 = vmatprep.mubr.msk.f32.mxu1 %vm416_vm0, %v1171_v20  ;;  %1192 = vpow2.f32 %v928_v3 }
  0x89   : > { %v1175_v28 = vpop.eup %1174  ;;  %1034 = vmatmul.mubr.msk.f32.gmra.mrb[2].mxu0 %vm416_vm0, %v1173_v25  ;;  %1194 = vpow2.f32 %v944_v8  ;;  %v1688_v25 = vld [vmem:[%s1554_s7 + $0x70] sm:$0xff] }
  0x8a   : > { %v1177_v31 = vpop.eup %1176  ;;  %1058 = vmatmul.mubr.msk.f32.gmra.mrb[2].mxu1 %vm416_vm0, %v1175_v28  ;;  %1196 = vpow2.f32 %v929_v16  ;;  %v1685_v16 = vld [vmem:[%s1554_s7 + $0xe8] sm:$0xff] }
  0x8b   : > { %v1179_v34 = vpop.eup %1178  ;;  %1036 = vmatprep.mubr.msk.f32.mxu0 %vm416_vm0, %v1177_v31  ;;  %1198 = vpow2.f32 %v945_v22  ;;  %v1692_v31 = vld [vmem:[%s1554_s7 + $0xf0] sm:$0xff] }
  0x8c   : > { %v1181_v36 = vpop.eup %1180  ;;  %1060 = vmatprep.mubr.msk.f32.mxu1 %vm416_vm0, %v1179_v34  ;;  %1200 = vpow2.f32 %v930_v26 }
  0x8d   : > { %v1183_v38 = vpop.eup %1182  ;;  %1037 = vmatmul.mubr.msk.f32.gmra.mrb[4].mxu0 %vm416_vm0, %v1181_v36  ;;  %1202 = vpow2.f32 %v946_v29  ;;  %v933_v29 = vmul.f32 -1.442695, %v1682_v7  ;;  %v1696_v36 = vld [vmem:[%s1554_s7 + $0x78] sm:$0xff] }
  0x8e   : > { %v1185_v40 = vpop.eup %1184  ;;  %1061 = vmatmul.mubr.msk.f32.gmra.mrb[4].mxu1 %vm416_vm0, %v1183_v38  ;;  %1204 = vpow2.f32 %v931_v32  ;;  %v934_v38 = vmul.f32 -1.442695, %v1688_v25 }
  0x8f   : > { %v1187_v41 = vpop.eup %1186  ;;  %1039 = vmatprep.mubr.msk.f32.mxu0 %vm416_vm0, %v1185_v40  ;;  %1206 = vpow2.f32 %v947_v35  ;;  %v949_v35 = vmul.f32 -1.442695, %v1685_v16 }
  0x90   : > { %v1189_v42 = vpop.eup %1188  ;;  %v341_v43 = vadd.f32 1.0, %v1187_v41  ;;  %1208 = vpow2.f32 %v932_v37  ;;  %v950_v41 = vmul.f32 -1.442695, %v1692_v31 }
  0x91   : > { %v1191_v44 = vpop.eup %1190  ;;  %v326_v45 = vadd.f32 1.0, %v1189_v42  ;;  %1210 = vpow2.f32 %v948_v39  ;;  %v1701_v39 = vld [vmem:[%s1554_s7 + $0xf8] sm:$0xff] }
  0x92   : > { %v1193_v47 = vpop.eup %1192  ;;  %1212 = vrcp.f32 %v341_v43  ;;  %v342_v48 = vadd.f32 1.0, %v1191_v44  ;;  %v935_v43 = vmul.f32 -1.442695, %v1696_v36 }
  0x93   : > { %v1195_v50 = vpop.eup %1194  ;;  %1214 = vrcp.f32 %v326_v45  ;;  %v327_v51 = vadd.f32 1.0, %v1193_v47  ;;  %v951_v45 = vmul.f32 -1.442695, %v1701_v39 }
  0x94   : > { %v1197_v53 = vpop.eup %1196  ;;  %1216 = vrcp.f32 %v342_v48  ;;  %v343_v54 = vadd.f32 1.0, %v1195_v50 }
  0x95   : > { %v1199_v55 = vpop.eup %1198  ;;  %1218 = vrcp.f32 %v327_v51  ;;  %v328_v57 = vadd.f32 1.0, %v1197_v53 }
  0x96   : > { %v1201_v58 = vpop.eup %1200  ;;  %1220 = vrcp.f32 %v343_v54  ;;  %v344_v59 = vadd.f32 1.0, %v1199_v55 }
  0x97   : > { %v1203_v61 = vpop.eup %1202  ;;  %1222 = vrcp.f32 %v328_v57  ;;  %v329_v62 = vadd.f32 1.0, %v1201_v58 }
  0x98   : > { %v1205_v0 = vpop.eup %1204  ;;  %1224 = vrcp.f32 %v344_v59  ;;  %v345_v3 = vadd.f32 1.0, %v1203_v61 }
  0x99   : > { %v1207_v8 = vpop.eup %1206  ;;  %1226 = vrcp.f32 %v329_v62  ;;  %v330_v14 = vadd.f32 1.0, %v1205_v0 }
  0x9a   : > { %v1209_v20 = vpop.eup %1208  ;;  %1228 = vrcp.f32 %v345_v3  ;;  %v346_v22 = vadd.f32 1.0, %v1207_v8 }
  0x9b   : > { %v1211_v26 = vpop.eup %1210  ;;  %1230 = vrcp.f32 %v330_v14  ;;  %v331_v28 = vadd.f32 1.0, %v1209_v20 }
  0x9c   : > { %v1213_v32 = vpop.eup %1212  ;;  %1232 = vrcp.f32 %v346_v22  ;;  %v347_v34 = vadd.f32 1.0, %v1211_v26 }
  0x9d   : > { %v1215_v37 = vpop.eup %1214  ;;  %1063 = vmatprep.mubr.msk.f32.mxu1 %vm416_vm0, %v1213_v32  ;;  %1234 = vrcp.f32 %v331_v28 }
  0x9e   : > { %v1217_v40 = vpop.eup %1216  ;;  %1040 = vmatmul.mubr.msk.f32.gmra.mrb[6].mxu0 %vm416_vm0, %v1215_v37  ;;  %1236 = vrcp.f32 %v347_v34 }
  0x9f   : > { %v1219_v42 = vpop.eup %1218  ;;  %1064 = vmatmul.mubr.msk.f32.gmra.mrb[6].mxu1 %vm416_vm0, %v1217_v40  ;;  %1238 = vpow2.f32 %v933_v29 }
  0xa0   : > { %v1221_v44 = vpop.eup %1220  ;;  %1042 = vmatprep.mubr.msk.f32.mxu0 %vm416_vm0, %v1219_v42  ;;  %1240 = vpow2.f32 %v949_v35 }
  0xa1   : > { %v1223_v47 = vpop.eup %1222  ;;  %1066 = vmatprep.mubr.msk.f32.mxu1 %vm416_vm0, %v1221_v44  ;;  %1242 = vpow2.f32 %v934_v38 }
  0xa2   : > { %v1225_v48 = vpop.eup %1224  ;;  %1043 = vmatmul.mubr.msk.f32.gmra.mrb[8].mxu0 %vm416_vm0, %v1223_v47  ;;  %1244 = vpow2.f32 %v950_v41 }
  0xa3   : > { %v1227_v50 = vpop.eup %1226  ;;  %1067 = vmatmul.mubr.msk.f32.gmra.mrb[8].mxu1 %vm416_vm0, %v1225_v48  ;;  %1246 = vpow2.f32 %v935_v43 }
  0xa4   : > { %v1229_v51 = vpop.eup %1228  ;;  %1045 = vmatprep.mubr.msk.f32.mxu0 %vm416_vm0, %v1227_v50  ;;  %1248 = vpow2.f32 %v951_v45 }
  0xa5   : > { %v1231_v53 = vpop.eup %1230  ;;  %1069 = vmatprep.mubr.msk.f32.mxu1 %vm416_vm0, %v1229_v51 }
  0xa6   : > { %v1233_v54 = vpop.eup %1232  ;;  %1046 = vmatmul.mubr.msk.f32.gmra.mrb[10].mxu0 %vm416_vm0, %v1231_v53 }
  0xa7   : > { %v1235_v55 = vpop.eup %1234  ;;  %1070 = vmatmul.mubr.msk.f32.gmra.mrb[10].mxu1 %vm416_vm0, %v1233_v54 }
  0xa8   : > { %v1237_v57 = vpop.eup %1236  ;;  %1048 = vmatprep.mubr.msk.f32.mxu0 %vm416_vm0, %v1235_v55 }
  0xa9   : > { %v1239_v58 = vpop.eup %1238  ;;  %1072 = vmatprep.mubr.msk.f32.mxu1 %vm416_vm0, %v1237_v57 }
  0xaa   : > { %v1241_v59 = vpop.eup %1240  ;;  %v332_v61 = vadd.f32 1.0, %v1239_v58 }
  0xab   : > { %v1243_v62 = vpop.eup %1242  ;;  %v348_v0 = vadd.f32 1.0, %v1241_v59 }
  0xac   : > { %v1245_v3 = vpop.eup %1244  ;;  %1250 = vrcp.f32 %v332_v61  ;;  %v333_v8 = vadd.f32 1.0, %v1243_v62 }
  0xad   : > { %v1247_v14 = vpop.eup %1246  ;;  %1252 = vrcp.f32 %v348_v0  ;;  %v349_v20 = vadd.f32 1.0, %v1245_v3 }
  0xae   : > { %v1249_v22 = vpop.eup %1248  ;;  %1254 = vrcp.f32 %v333_v8  ;;  %v334_v26 = vadd.f32 1.0, %v1247_v14 }
  0xaf   : > { %1256 = vrcp.f32 %v349_v20  ;;  %v350_v28 = vadd.f32 1.0, %v1249_v22 }
  0xb0   : > { %1258 = vrcp.f32 %v334_v26 }
  0xb1   : > { %1260 = vrcp.f32 %v350_v28 }
  0xb6   : > { %v1251_v29 = vpop.eup %1250 }
  0xb7   : > { %v1253_v32 = vpop.eup %1252  ;;  %1049 = vmatmul.mubr.msk.f32.gmra.mrb[12].mxu0 %vm416_vm0, %v1251_v29 }
  0xb8   : > { %v1255_v34 = vpop.eup %1254  ;;  %1073 = vmatmul.mubr.msk.f32.gmra.mrb[12].mxu1 %vm416_vm0, %v1253_v32 }
  0xb9   : > { %v1257_v35 = vpop.eup %1256  ;;  %1051 = vmatprep.mubr.msk.f32.mxu0 %vm416_vm0, %v1255_v34 }
  0xba   : > { %v1259_v37 = vpop.eup %1258  ;;  %1075 = vmatprep.mubr.msk.f32.mxu1 %vm416_vm0, %v1257_v35 }
  0xbb   : > { %v1261_v38 = vpop.eup %1260  ;;  %1052 = vmatmul.mubr.msk.f32.gmra.mrb[14].mxu0 %vm416_vm0, %v1259_v37 }
  0xbc   : > { %1076 = vmatmul.mubr.msk.f32.gmra.mrb[14].mxu1 %vm416_vm0, %v1261_v38 }
 0x158   : > { %v1032_v40 = vpop.f32.mrb[0].mxu0 }
 0x159   : > { %v739_v41 = vmul.f32 %v1032_v40, %v1573_v5  ;;  %v1056_v42 = vpop.f32.mrb[0].mxu1  ;;  %v579_v43 = vpop.f32.mrb[1].mxu0 }
 0x15a   : > { %v755_v44 = vmul.f32 %v1056_v42, %v1576_v6  ;;  %v738_v45 = vmul.f32 %v579_v43, %v1565_v1  ;;  %v659_v47 = vpop.f32.mrb[1].mxu1 }
 0x15b   : > { %771 = vst [vmem:[%s1729_s20 + $0x8] sm:$0xff] %v739_v41  ;;  %v754_v5 = vmul.f32 %v659_v47, %v1568_v2 }
 0x15c   : > { %787 = vst [vmem:[%s1729_s20 + $0x88] sm:$0xff] %v755_v44  ;;  %770 = vst [vmem:[%s1729_s20] sm:$0xff] %v738_v45  ;;  %v1035_v6 = vpop.f32.mrb[2].mxu0 }
 0x15d   : > { %786 = vst [vmem:[%s1729_s20 + $0x80] sm:$0xff] %v754_v5  ;;  %v741_v1 = vmul.f32 %v1035_v6, %v1588_v12  ;;  %v1059_v48 = vpop.f32.mrb[2].mxu1  ;;  %v589_v50 = vpop.f32.mrb[3].mxu0 }
 0x15e   : > { %v757_v51 = vmul.f32 %v1059_v48, %v1591_v13  ;;  %v740_v53 = vmul.f32 %v589_v50, %v1581_v9  ;;  %v669_v54 = vpop.f32.mrb[3].mxu1 }
 0x15f   : > { %773 = vst [vmem:[%s1729_s20 + $0x18] sm:$0xff] %v741_v1  ;;  %v756_v2 = vmul.f32 %v669_v54, %v1584_v10 }
 0x160   : > { %789 = vst [vmem:[%s1729_s20 + $0x98] sm:$0xff] %v757_v51  ;;  %772 = vst [vmem:[%s1729_s20 + $0x10] sm:$0xff] %v740_v53  ;;  %v1038_v55 = vpop.f32.mrb[4].mxu0 }
 0x161   : > { %788 = vst [vmem:[%s1729_s20 + $0x90] sm:$0xff] %v756_v2  ;;  %v743_v12 = vmul.f32 %v1038_v55, %v1603_v19  ;;  %v1062_v57 = vpop.f32.mrb[4].mxu1  ;;  %v599_v58 = vpop.f32.mrb[5].mxu0 }
 0x162   : > { %v759_v13 = vmul.f32 %v1062_v57, %v1607_v21  ;;  %v742_v9 = vmul.f32 %v599_v58, %v1595_v15  ;;  %v679_v59 = vpop.f32.mrb[5].mxu1 }
 0x163   : > { %775 = vst [vmem:[%s1729_s20 + $0x28] sm:$0xff] %v743_v12  ;;  %v758_v61 = vmul.f32 %v679_v59, %v1599_v17 }
 0x164   : > { %791 = vst [vmem:[%s1729_s20 + $0xa8] sm:$0xff] %v759_v13  ;;  %774 = vst [vmem:[%s1729_s20 + $0x20] sm:$0xff] %v742_v9 }
 0x165   : > { %790 = vst [vmem:[%s1729_s20 + $0xa0] sm:$0xff] %v758_v61 }
 0x171   : > { %v1041_v10 = vpop.f32.mrb[6].mxu0 }
 0x172   : > { %v745_v19 = vmul.f32 %v1041_v10, %v1620_v49  ;;  %v1065_v62 = vpop.f32.mrb[6].mxu1  ;;  %v609_v0 = vpop.f32.mrb[7].mxu0 }
 0x173   : > { %v761_v21 = vmul.f32 %v1065_v62, %v1623_v52  ;;  %v744_v15 = vmul.f32 %v609_v0, %v1611_v23  ;;  %v689_v3 = vpop.f32.mrb[7].mxu1 }
 0x174   : > { %777 = vst [vmem:[%s1729_s20 + $0x38] sm:$0xff] %v745_v19  ;;  %v760_v17 = vmul.f32 %v689_v3, %v1617_v46 }
 0x175   : > { %793 = vst [vmem:[%s1729_s20 + $0xb8] sm:$0xff] %v761_v21  ;;  %776 = vst [vmem:[%s1729_s20 + $0x30] sm:$0xff] %v744_v15  ;;  %v1044_v8 = vpop.f32.mrb[8].mxu0 }
 0x176   : > { %792 = vst [vmem:[%s1729_s20 + $0xb0] sm:$0xff] %v760_v17  ;;  %v747_v49 = vmul.f32 %v1044_v8, %v1636_v63  ;;  %v1068_v14 = vpop.f32.mrb[8].mxu1  ;;  %v619_v20 = vpop.f32.mrb[9].mxu0 }
 0x177   : > { %v763_v52 = vmul.f32 %v1068_v14, %v1641_v4  ;;  %v746_v23 = vmul.f32 %v619_v20, %v1627_v56  ;;  %v699_v22 = vpop.f32.mrb[9].mxu1 }
 0x178   : > { %779 = vst [vmem:[%s1729_s20 + $0x48] sm:$0xff] %v747_v49  ;;  %v762_v46 = vmul.f32 %v699_v22, %v1631_v60 }
 0x179   : > { %795 = vst [vmem:[%s1729_s20 + $0xc8] sm:$0xff] %v763_v52  ;;  %778 = vst [vmem:[%s1729_s20 + $0x40] sm:$0xff] %v746_v23  ;;  %v1047_v26 = vpop.f32.mrb[10].mxu0 }
 0x17a   : > { %794 = vst [vmem:[%s1729_s20 + $0xc0] sm:$0xff] %v762_v46  ;;  %v749_v63 = vmul.f32 %v1047_v26, %v1656_v24  ;;  %v1071_v28 = vpop.f32.mrb[10].mxu1  ;;  %v629_v29 = vpop.f32.mrb[11].mxu0 }
 0x17b   : > { %v765_v4 = vmul.f32 %v1071_v28, %v1661_v27  ;;  %v748_v56 = vmul.f32 %v629_v29, %v1646_v11  ;;  %v709_v32 = vpop.f32.mrb[11].mxu1 }
 0x17c   : > { %781 = vst [vmem:[%s1729_s20 + $0x58] sm:$0xff] %v749_v63  ;;  %v764_v34 = vmul.f32 %v709_v32, %v1651_v18 }
 0x17d   : > { %797 = vst [vmem:[%s1729_s20 + $0xd8] sm:$0xff] %v765_v4  ;;  %780 = vst [vmem:[%s1729_s20 + $0x50] sm:$0xff] %v748_v56 }
 0x17e   : > { %796 = vst [vmem:[%s1729_s20 + $0xd0] sm:$0xff] %v764_v34 }
 0x18a   : > { %v1050_v60 = vpop.f32.mrb[12].mxu0 }
 0x18b   : > { %v751_v24 = vmul.f32 %v1050_v60, %v1682_v7  ;;  %v1074_v35 = vpop.f32.mrb[12].mxu1  ;;  %v639_v37 = vpop.f32.mrb[13].mxu0 }
 0x18c   : > { %v767_v27 = vmul.f32 %v1074_v35, %v1685_v16  ;;  %v750_v11 = vmul.f32 %v639_v37, %v1666_v30  ;;  %v719_v38 = vpop.f32.mrb[13].mxu1 }
 0x18d   : > { %783 = vst [vmem:[%s1729_s20 + $0x68] sm:$0xff] %v751_v24  ;;  %v766_v18 = vmul.f32 %v719_v38, %v1671_v33  ;;  %809 = sbr.rel (!%p1871_p8) target bundleno = 432 (0x1b0), region = 40 }
 0x18e   : > { %799 = vst [vmem:[%s1729_s20 + $0xe8] sm:$0xff] %v767_v27  ;;  %782 = vst [vmem:[%s1729_s20 + $0x60] sm:$0xff] %v750_v11  ;;  %v1053_v40 = vpop.f32.mrb[14].mxu0 }
 0x18f   : > { %798 = vst [vmem:[%s1729_s20 + $0xe0] sm:$0xff] %v766_v18  ;;  %v753_v7 = vmul.f32 %v1053_v40, %v1696_v36  ;;  %v1077_v41 = vpop.f32.mrb[14].mxu1  ;;  %v649_v42 = vpop.f32.mrb[15].mxu0 }
 0x190   : > { %v769_v16 = vmul.f32 %v1077_v41, %v1701_v39  ;;  %v752_v30 = vmul.f32 %v649_v42, %v1688_v25  ;;  %v729_v43 = vpop.f32.mrb[15].mxu1 }
 0x191   : > { %785 = vst [vmem:[%s1729_s20 + $0x78] sm:$0xff] %v753_v7  ;;  %v768_v44 = vmul.f32 %v729_v43, %v1692_v31 }
 0x192   : > { %801 = vst [vmem:[%s1729_s20 + $0xf8] sm:$0xff] %v769_v16  ;;  %784 = vst [vmem:[%s1729_s20 + $0x70] sm:$0xff] %v752_v30 }
 0x193   : > { %800 = vst [vmem:[%s1729_s20 + $0xf0] sm:$0xff] %v768_v44 }
 0x194   : > { %s1880_s28 = smov (!%p812_p9, %s811_s28), 32 }
 0x195   : > { %s1796_s3 = sshll.u32 %s1880_s28, 7 }
 0x196   : > { %s816_s4 = ssub.s32 4096, %s1796_s3 }
 0x197   : > { %817 = vsyncadd %s803_s23, %s816_s4  ;;  %p987_p10 = scmp.ne.s32.totalorder %s1796_s3, 0  ;;  %s994_s21 = sshll.u32 %s1433_s13, 12 }
 0x198   : > { %s1806_s16 = scalar_lea.hbm %s1856_s2, %s994_s21  ;;  %s822_s17 = sshll.u32 %s1729_s20, 4  ;;  %s1809_s17 = int_to_ptr.vmem [resolvable:$true] %s822_s17 }
 0x199   : > { %s1318_s24 = scalar_lea.vmem %s1809_s17, %s1796_s3  ;;  %s1394_s26 = smov [#allocation7]  }
 0x19a   : > { %p1319_p1 = scmp.ne.s32.totalorder %s1809_s17, %s1318_s24  ;;  %s1322_s25 = sshll.u32 %s1394_s26, 4  ;;  %s1323_s25 = int_to_ptr.vmem [resolvable:$false] %s1322_s25 }
 0x19b   : > { %s1324_s13 = scalar_lea.vmem %s1323_s25, 8192  ;;  %p1325_p4 = scmp.lt.s32.totalorder %s1809_s17, %s1323_s25 }
 0x19c   : > { %p1320_p0 = pnand %p1319_p1, %p987_p10  ;;  %p1326_p6 = scmp.lt.s32.totalorder %s1324_s13, %s1318_s24 }
 0x19e   : > { %p1321_p7 = pneg %p1320_p0  ;;  %p1327_p11 = por %p1326_p6, %p1325_p4 }
 0x1a0   : > { %p1328_p13 = pnand %p1327_p11, %p1321_p7 }
 0x1a2   : > { %1331 = shalt.err (!%p1328_p13)
}
 0x1a3   : > { %s1332_s19 = scalar_lea.hbm %s1806_s16, %s1796_s3  ;;  %s1336_s6 = scalar_lea.hbm %s1856_s2, 16000 }
 0x1a4   : > { %p1333_p12 = scmp.ne.s32.totalorder %s1806_s16, %s1332_s19  ;;  %p1337_p3 = scmp.lt.u32.totalorder %s1806_s16, %s1856_s2 }
 0x1a5   : > { %p1338_p8 = scmp.lt.u32.totalorder %s1336_s6, %s1332_s19  ;;  %p1340_p1 = scmp.lt.u32.totalorder %s1332_s19, %s1806_s16 }
 0x1a6   : > { %p1334_p2 = pnand %p1333_p12, %p987_p10 }
 0x1a7   : > { %p1339_p9 = por %p1338_p8, %p1337_p3 }
 0x1a8   : > { %p1335_p5 = pneg %p1334_p2 }
 0x1a9   : > { %p1341_p0 = por %p1340_p1, %p1339_p9 }
 0x1ab   : > { %p1342_p7 = pnand %p1341_p0, %p1335_p5 }
 0x1ad   : > { %1345 = shalt.err (!%p1342_p7)
}
 0x1ae   : > { %s1395_s27 = smov 128   ;;  %s1396_s28 = smov 8  }
 0x1af   : > { %828 = dma.vmem_to_hbm [thread:$0]  (%p987_p10), %s1809_s17, %s1796_s3, %s1806_s16, %s803_s23, %s1395_s27, %s1395_s27, %s1396_s28  }
 0x1b0 PF: > { %p1096_p4 = scmp.ge.s32.totalorder %s1388_s12, 2  ;;  %s837_s4 = sand.u32 1, %s1376_s9  }
 0x1b1   : > { %p1872_p6 = scmp.ne.s32.totalorder %s1863_s22, 0  ;;  %s838_s21 = scalar_lea.sflag [#allocation4], %s837_s4 }
 0x1b3   : > { %p1091_p11 = pnand %p1096_p4, %p1872_p6 }
 0x1b5   : > { %1371 = dma.done.wait (!%p1091_p11), %s838_s21, 4096  }
 0x1b6   : > { %1373 = vsyncadd (!%p1091_p11), %s838_s21, 4294963200  ;;  %p16_p13 = scmp.ge.s32.totalorder %s1437_s15, 6   ;;  %s1873_s9 = smov %s1380_s10 }
 0x1b7   : > { %s1874_s10 = smov %s1384_s11  ;;  %s1875_s11 = smov %s1449_s18 }
 0x1b8   : > { %s1876_s12 = smov %s1437_s15  ;;  %18 = sbr.rel (!%p16_p13) target bundleno = 6 (0x6), region = 77 }
 0x1bf   :  { %843 = vsyncpa [#allocation3], 1 }
 0x1c0   :  { %845 = vsyncpa [#allocation3 + $0x1], 1 }
 0x1c1   :  { %846 = vsyncpa [#allocation6], 1 }
 0x1c2   :  { %847 = vsyncpa [#allocation4], 1 }
 0x1c3   :  { %849 = vsyncpa [#allocation4 + $0x1], 1 }

</bundles_post_ra>
